<compile_context>
chip_gen: v7x
topology: tpu7x:2x2x1
jax: 0.10.0
libtpu: 0.0.40
codegen_flags: <defaults>
</compile_context>

<pallas_src>
import functools

import jax
import jax.numpy as jnp
from jax.experimental import pallas as pl
from jax.experimental.pallas import tpu as pltpu


def _round_up(n: int, m: int) -> int:
    return ((n + m - 1) // m) * m


def _mlp_kernel(x_ref, w1_ref, b1_ref, w2_ref, b2_ref, w3_ref, b3_ref, o_ref,
                *, classification_mode: bool):
    cd = w1_ref.dtype  # MXU compute dtype (f32 or bf16)
    # Layer 1: Linear + ReLU. x arrives with its native (un-padded) K; any cast to
    # the MXU dtype happens here in-kernel (no wrapper-side HBM materialization).
    x = x_ref[...].astype(cd)
    h = jnp.dot(x, w1_ref[...], preferred_element_type=jnp.float32)
    h = jnp.maximum(h + b1_ref[...], 0.0)
    # Hidden layer (num_layers - 1 == 1): Linear + ReLU.
    h = jnp.dot(h.astype(cd), w2_ref[...], preferred_element_type=jnp.float32)
    h = jnp.maximum(h + b2_ref[...], 0.0)
    # Output layer: narrow (out_size rounded to 8) so the HBM writeback is only the
    # real columns, not a 128-wide slab; sigmoid runs on the narrow tile only.
    out = jnp.dot(h.astype(cd), w3_ref[...], preferred_element_type=jnp.float32)
    out = out + b3_ref[...]
    if classification_mode:
        out = jax.nn.sigmoid(out)
    o_ref[...] = out.astype(o_ref.dtype)


def init_params(key, input_size=150, hidden_layer_size=50, output_size=1):
    """PyTorch-nn.Linear-style init: U(-1/sqrt(fan_in), 1/sqrt(fan_in)).
    Weights are (in, out) so each layer is y = x @ W + b (W pre-transposed)."""
    def linear(k, fan_in, fan_out):
        kw, kb = jax.random.split(k)
        bound = 1.0 / jnp.sqrt(fan_in)
        w = jax.random.uniform(kw, (fan_in, fan_out), jnp.float32, -bound, bound)
        b = jax.random.uniform(kb, (1, fan_out), jnp.float32, -bound, bound)
        return w, b

    k1, k2, k3 = jax.random.split(key, 3)
    w1, b1 = linear(k1, input_size, hidden_layer_size)         # fc1
    w2, b2 = linear(k2, hidden_layer_size, hidden_layer_size)  # hidden_layers[0]
    w3, b3 = linear(k3, hidden_layer_size, output_size)        # output_layer
    return (w1, b1, w2, b2, w3, b3)


def pad_params(params, compute_dtype=jnp.float32):
    """One-time zero-padding of feature dims (results unchanged):
      * w1: pad N only (50 -> 128); K (=input_size) stays un-padded so x streams
        its native bytes from HBM.
      * w2: pad K and N (50 -> 128).  Padded hidden columns stay exactly zero
        (zero bias + ReLU), so padded K rows contribute nothing.
      * w3: pad K (50 -> 128) and N to a multiple of 8 (1 -> 8) to keep the HBM
        output writeback narrow.
    Weights may be cast to bf16 for the MXU fast path; biases stay f32."""
    w1, b1, w2, b2, w3, b3 = params
    d_in, d_h = w1.shape
    d_out = w3.shape[1]
    D_H = _round_up(d_h, 128)
    D_OUT = _round_up(d_out, 8)

    def pad_w(w, rows, cols):
        return jnp.pad(w, ((0, rows - w.shape[0]), (0, cols - w.shape[1]))).astype(compute_dtype)

    def pad_b(b, cols):
        return jnp.pad(b, ((0, 0), (0, cols - b.shape[1]))).astype(jnp.float32)

    return (pad_w(w1, d_in, D_H), pad_b(b1, D_H),
            pad_w(w2, D_H, D_H),  pad_b(b2, D_H),
            pad_w(w3, D_H, D_OUT), pad_b(b3, D_OUT))


def mlp_forward(x, padded_params, *, out_size, classification_mode=False,
                block_batch=1024, min_grid_steps=2):
    """Fused MLP forward: one pallas_call, grid over batch tiles, resident weights.
    Returns (output[:, :out_size], 1) mirroring PyTorch's `return (x, self.dummy)`."""
    w1, b1, w2, b2, w3, b3 = padded_params
    batch, in_features = x.shape
    d_in, D_H = w1.shape
    D_OUT = w3.shape[1]
    assert in_features == d_in, (in_features, d_in)

    # Batch tile: multiple of 8 sublanes (or the full batch), sized so that
    #   * v5e/v6e: tiles up to `block_batch` rows amortize ~0.35us/grid-step overhead,
    #   * v7x: >= `min_grid_steps` grid steps so the "parallel" axis uses both TCs.
    tb = min(block_batch, _round_up(pl.cdiv(batch, min_grid_steps), 8))
    tb = max(tb, 8)
    if tb >= batch:
        tb = batch          # single tile: block == full array dim (always legal)
    grid = (pl.cdiv(batch, tb),)  # ragged last tile; OOB rows masked on store

    kernel = functools.partial(_mlp_kernel, classification_mode=classification_mode)

    nbytes = lambda a: int(a.size) * a.dtype.itemsize
    flops = 2 * batch * (d_in * D_H + D_H * D_H + D_H * D_OUT)
    bytes_accessed = (nbytes(x) + sum(nbytes(p) for p in padded_params)
                      + batch * D_OUT * 4)
    transcendentals = batch * D_OUT if classification_mode else 0

    out = pl.pallas_call(
        kernel,
        out_shape=jax.ShapeDtypeStruct((batch, D_OUT), jnp.float32),
        grid=grid,
        in_specs=[
            pl.BlockSpec((tb, d_in), lambda i: (i, 0)),    # x: streamed, native K
            pl.BlockSpec((d_in, D_H), lambda i: (0, 0)),   # w1: resident in VMEM
            pl.BlockSpec((1, D_H), lambda i: (0, 0)),      # b1
            pl.BlockSpec((D_H, D_H), lambda i: (0, 0)),    # w2
            pl.BlockSpec((1, D_H), lambda i: (0, 0)),      # b2
            pl.BlockSpec((D_H, D_OUT), lambda i: (0, 0)),  # w3
            pl.BlockSpec((1, D_OUT), lambda i: (0, 0)),    # b3
        ],
        out_specs=pl.BlockSpec((tb, D_OUT), lambda i: (i, 0)),
        compiler_params=pltpu.CompilerParams(
            dimension_semantics=("parallel",),   # megacore sharding on v7x
            # Resident weights (~0.3 MiB) + double-buffered x/out tiles (<1.5 MiB
            # at tb=1024) -> well under v7x's 64 MiB physical VMEM.
            vmem_limit_bytes=32 * 1024 * 1024,
        ),
        cost_estimate=pl.CostEstimate(
            flops=flops, transcendentals=transcendentals,
            bytes_accessed=bytes_accessed),
    )(x, w1, b1, w2, b2, w3, b3)

    # Slice away the (8-rounded) padded output columns.
    return out[:, :out_size], 1


def _reference(x, params, classification_mode=False):
    w1, b1, w2, b2, w3, b3 = params
    h = jnp.maximum(x @ w1 + b1, 0.0)
    h = jnp.maximum(h @ w2 + b2, 0.0)
    o = h @ w3 + b3
    return jax.nn.sigmoid(o) if classification_mode else o


if __name__ == "__main__":
    key = jax.random.PRNGKey(0)
    k_x, k_p = jax.random.split(key)

    batch, input_size, hidden, out_size = 4, 150, 50, 1
    x = jax.random.normal(k_x, (batch, input_size), jnp.float32)
    params = init_params(k_p, input_size=input_size, hidden_layer_size=hidden,
                         output_size=out_size)

    # --- f32 path (tight tolerance) ---------------------------------------------
    padded_f32 = pad_params(params, compute_dtype=jnp.float32)
    out, dummy = mlp_forward(x, padded_f32, out_size=out_size, classification_mode=False)
    out = jax.block_until_ready(out)
    ref = _reference(x, params)
    assert out.shape == (batch, out_size), out.shape
    assert dummy == 1
    assert jnp.allclose(out, ref, atol=1e-5, rtol=1e-5), "f32 mismatch vs reference"

    # --- classification_mode (sigmoid) path ---------------------------------------
    out_c, _ = mlp_forward(x, padded_f32, out_size=out_size, classification_mode=True)
    out_c = jax.block_until_ready(out_c)
    ref_c = _reference(x, params, classification_mode=True)
    assert jnp.allclose(out_c, ref_c, atol=1e-5, rtol=1e-5), "sigmoid mismatch vs reference"

    # --- bf16 MXU fast path (v6e/v7x): in-kernel cast, f32 accumulation ------------
    padded_bf16 = pad_params(params, compute_dtype=jnp.bfloat16)
    out_b, _ = mlp_forward(x, padded_bf16, out_size=out_size, classification_mode=False)
    out_b = jax.block_until_ready(out_b)
    assert jnp.allclose(out_b, ref, atol=1e-1, rtol=1e-1), "bf16 mismatch vs reference"

    # --- larger batch: >=2 grid steps (megacore), ragged last tile, resident weights
    big_batch = 1000
    xb = jax.random.normal(k_x, (big_batch, input_size), jnp.float32)
    out_big, _ = mlp_forward(xb, padded_f32, out_size=out_size)
    out_big = jax.block_until_ready(out_big)
    assert out_big.shape == (big_batch, out_size), out_big.shape
    assert jnp.allclose(out_big, _reference(xb, params), atol=1e-4, rtol=1e-4), \
        "large-batch mismatch vs reference"

    # TODO(synk): at the toy deployed shapes (batch~4, 150/50/1) this op is pure
    # launch overhead; in production it should be fused into surrounding work.
    print("KERNEL_OK")
</pallas_src>

<mosaic_0001>
module attributes {stable_mosaic.version = 11 : i64} {
  func.func @_mlp_kernel(%arg0: i32, %arg1: memref<4x150xf32, #tpu.memory_space<vmem>>, %arg2: memref<150x128xf32, #tpu.memory_space<vmem>>, %arg3: memref<1x128xf32, #tpu.memory_space<vmem>>, %arg4: memref<128x128xf32, #tpu.memory_space<vmem>>, %arg5: memref<1x128xf32, #tpu.memory_space<vmem>>, %arg6: memref<128x8xf32, #tpu.memory_space<vmem>>, %arg7: memref<1x8xf32, #tpu.memory_space<vmem>>, %arg8: memref<4x8xf32, #tpu.memory_space<vmem>>) attributes {dimension_semantics = [#tpu.dimension_semantics<parallel>], iteration_bounds = array<i64: 1>, scalar_prefetch = 0 : i64, scratch_operands = 0 : i64, tpu.core_type = #tpu.core_type<tc>, window_params = [{transform_indices = @transform_0, window_bounds = array<i64: 4, 150>}, {pipeline_mode = #tpu.pipeline_mode<synchronous>, transform_indices = @transform_1, window_bounds = array<i64: 150, 128>}, {pipeline_mode = #tpu.pipeline_mode<synchronous>, transform_indices = @transform_2, window_bounds = array<i64: 1, 128>}, {pipeline_mode = #tpu.pipeline_mode<synchronous>, transform_indices = @transform_3, window_bounds = array<i64: 128, 128>}, {pipeline_mode = #tpu.pipeline_mode<synchronous>, transform_indices = @transform_4, window_bounds = array<i64: 1, 128>}, {pipeline_mode = #tpu.pipeline_mode<synchronous>, transform_indices = @transform_5, window_bounds = array<i64: 128, 8>}, {pipeline_mode = #tpu.pipeline_mode<synchronous>, transform_indices = @transform_6, window_bounds = array<i64: 1, 8>}, {transform_indices = @transform_7, window_bounds = array<i64: 4, 8>}]} {
    %c0 = arith.constant 0 : index
    %c0_0 = arith.constant 0 : index
    %0 = vector.load %arg1[%c0, %c0_0] : memref<4x150xf32, #tpu.memory_space<vmem>>, vector<4x150xf32>
    %c0_1 = arith.constant 0 : index
    %c0_2 = arith.constant 0 : index
    %1 = vector.load %arg2[%c0_1, %c0_2] : memref<150x128xf32, #tpu.memory_space<vmem>>, vector<150x128xf32>
    %cst = arith.constant dense<0.000000e+00> : vector<4x128xf32>
    %2 = tpu.matmul %0, %1, %cst {dimension_numbers = #tpu.dot_dimension_numbers<[1], [0], [0], [1], [0, 0, 1, 1], [], []>} : vector<4x150xf32>, vector<150x128xf32>, vector<4x128xf32> -> vector<4x128xf32>
    %c0_3 = arith.constant 0 : index
    %c0_4 = arith.constant 0 : index
    %3 = vector.load %arg3[%c0_3, %c0_4] : memref<1x128xf32, #tpu.memory_space<vmem>>, vector<1x128xf32>
    %4 = vector.broadcast %3 : vector<1x128xf32> to vector<4x128xf32>
    %5 = arith.addf %2, %4 : vector<4x128xf32>
    %cst_5 = arith.constant 0.000000e+00 : f32
    %6 = vector.broadcast %cst_5 : f32 to vector<4x128xf32>
    %7 = arith.maximumf %5, %6 : vector<4x128xf32>
    %c0_6 = arith.constant 0 : index
    %c0_7 = arith.constant 0 : index
    %8 = vector.load %arg4[%c0_6, %c0_7] : memref<128x128xf32, #tpu.memory_space<vmem>>, vector<128x128xf32>
    %cst_8 = arith.constant dense<0.000000e+00> : vector<4x128xf32>
    %9 = tpu.matmul %7, %8, %cst_8 {dimension_numbers = #tpu.dot_dimension_numbers<[1], [0], [0], [1], [0, 0, 1, 1], [], []>} : vector<4x128xf32>, vector<128x128xf32>, vector<4x128xf32> -> vector<4x128xf32>
    %c0_9 = arith.constant 0 : index
    %c0_10 = arith.constant 0 : index
    %10 = vector.load %arg5[%c0_9, %c0_10] : memref<1x128xf32, #tpu.memory_space<vmem>>, vector<1x128xf32>
    %11 = vector.broadcast %10 : vector<1x128xf32> to vector<4x128xf32>
    %12 = arith.addf %9, %11 : vector<4x128xf32>
    %cst_11 = arith.constant 0.000000e+00 : f32
    %13 = vector.broadcast %cst_11 : f32 to vector<4x128xf32>
    %14 = arith.maximumf %12, %13 : vector<4x128xf32>
    %c0_12 = arith.constant 0 : index
    %c0_13 = arith.constant 0 : index
    %15 = vector.load %arg6[%c0_12, %c0_13] : memref<128x8xf32, #tpu.memory_space<vmem>>, vector<128x8xf32>
    %cst_14 = arith.constant dense<0.000000e+00> : vector<4x8xf32>
    %16 = tpu.matmul %14, %15, %cst_14 {dimension_numbers = #tpu.dot_dimension_numbers<[1], [0], [0], [1], [0, 0, 1, 1], [], []>} : vector<4x128xf32>, vector<128x8xf32>, vector<4x8xf32> -> vector<4x8xf32>
    %c0_15 = arith.constant 0 : index
    %c0_16 = arith.constant 0 : index
    %17 = vector.load %arg7[%c0_15, %c0_16] : memref<1x8xf32, #tpu.memory_space<vmem>>, vector<1x8xf32>
    %18 = vector.broadcast %17 : vector<1x8xf32> to vector<4x8xf32>
    %19 = arith.addf %16, %18 : vector<4x8xf32>
    %c0_17 = arith.constant 0 : index
    %c0_18 = arith.constant 0 : index
    %20 = vector.load %arg8[%c0_17, %c0_18] : memref<4x8xf32, #tpu.memory_space<vmem>>, vector<4x8xf32>
    tpu.vector_store %arg8[%c0_17, %c0_18], %19 {strides = array<i32>} : memref<4x8xf32, #tpu.memory_space<vmem>>, vector<4x8xf32>,
    return
  }
  func.func @transform_0(%arg0: i32) -> (i32, i32) {
    %c0_i32 = arith.constant 0 : i32
    %c0_i32_0 = arith.constant 0 : i32
    return %arg0, %c0_i32 : i32, i32
  }
  func.func @transform_1(%arg0: i32) -> (i32, i32) {
    %c0_i32 = arith.constant 0 : i32
    %c0_i32_0 = arith.constant 0 : i32
    %c0_i32_1 = arith.constant 0 : i32
    return %c0_i32, %c0_i32_0 : i32, i32
  }
  func.func @transform_2(%arg0: i32) -> (i32, i32) {
    %c0_i32 = arith.constant 0 : i32
    %c0_i32_0 = arith.constant 0 : i32
    %c0_i32_1 = arith.constant 0 : i32
    return %c0_i32, %c0_i32_0 : i32, i32
  }
  func.func @transform_3(%arg0: i32) -> (i32, i32) {
    %c0_i32 = arith.constant 0 : i32
    %c0_i32_0 = arith.constant 0 : i32
    %c0_i32_1 = arith.constant 0 : i32
    return %c0_i32, %c0_i32_0 : i32, i32
  }
  func.func @transform_4(%arg0: i32) -> (i32, i32) {
    %c0_i32 = arith.constant 0 : i32
    %c0_i32_0 = arith.constant 0 : i32
    %c0_i32_1 = arith.constant 0 : i32
    return %c0_i32, %c0_i32_0 : i32, i32
  }
  func.func @transform_5(%arg0: i32) -> (i32, i32) {
    %c0_i32 = arith.constant 0 : i32
    %c0_i32_0 = arith.constant 0 : i32
    %c0_i32_1 = arith.constant 0 : i32
    return %c0_i32, %c0_i32_0 : i32, i32
  }
  func.func @transform_6(%arg0: i32) -> (i32, i32) {
    %c0_i32 = arith.constant 0 : i32
    %c0_i32_0 = arith.constant 0 : i32
    %c0_i32_1 = arith.constant 0 : i32
    return %c0_i32, %c0_i32_0 : i32, i32
  }
  func.func @transform_7(%arg0: i32) -> (i32, i32) {
    %c0_i32 = arith.constant 0 : i32
    %c0_i32_0 = arith.constant 0 : i32
    return %arg0, %c0_i32 : i32, i32
  }
}

</mosaic_0001>

<bundles_post_ra>
// kernel: tpu_custom_call.1
= control target key start
LH: loop header
LB: loop body
LE: loop exit
PB: predicated region body
PF: predicated region fallthrough
CT: control target
= control target key end

     0   :  { %12 = vsyncpa [#allocation3], 0  ;;  %s801_s0 = inlined_call_operand.vmem [shape: f32[4,150], index: 0, kind: input, shape index: {}]   ;;  %s802_s1 = inlined_call_operand.hbm [shape: f32[150,128], index: 1, kind: input, shape index: {}]   ;;  %s803_s2 = inlined_call_operand.vmem [shape: f32[1,128], index: 2, kind: input, shape index: {}]   ;;  %s804_s3 = inlined_call_operand.vmem [shape: f32[128,128], index: 3, kind: input, shape index: {}]   ;;  %s805_s4 = inlined_call_operand.vmem [shape: f32[1,128], index: 4, kind: input, shape index: {}]   ;;  %s806_s5 = inlined_call_operand.vmem [shape: f32[128,8], index: 5, kind: input, shape index: {}]   ;;  %s807_s6 = inlined_call_operand.vmem [shape: f32[1,8], index: 6, kind: input, shape index: {}]   ;;  %s808_s7 = inlined_call_operand.hbm [shape: f32[4,8], index: 7, kind: output, shape index: {}]  }
   0x1   :  { %13 = vsyncpa [#allocation4], 0  ;;  %s592_s24 = smov [#allocation2]   ;;  %s544_s28 = scalar_lea.hbm %s802_s1, 2432 }
   0x2   :  { %s21_s25 = sshll.u32 %s592_s24, 4  ;;  %p545_p0 = scmp.ne.s32.totalorder %s802_s1, %s544_s28  ;;  %s22_s25 = int_to_ptr.vmem [resolvable:$true] %s21_s25 }
   0x3   :  { %p548_p1 = scmp.lt.u32.totalorder %s544_s28, %s802_s1 }
   0x5   :  { %p550_p2 = pnand %p548_p1, %p545_p0 }
   0x7   :  { %553 = shalt.err (!%p550_p2)
}
   0x8   :  { %s554_s10 = scalar_lea.vmem %s22_s25, 2432  ;;  %p559_p4 = scmp.lt.s32.totalorder %s22_s25, %s22_s25 }
   0x9   :  { %p555_p3 = scmp.ne.s32.totalorder %s22_s25, %s554_s10  ;;  %p560_p5 = scmp.lt.s32.totalorder %s554_s10, %s554_s10 }
   0xb   :  { %p561_p6 = por %p560_p5, %p559_p4 }
   0xd   :  { %p562_p7 = pnand %p561_p6, %p555_p3 }
   0xf   :  { %565 = shalt.err (!%p562_p7)
}
  0x10   :  { %s593_s11 = smov 128   ;;  %s594_s12 = smov 8  }
  0x11   :  { %27 = dma.hbm_to_vmem [thread:$0]  %s802_s1, 2432, %s22_s25, [#allocation3], %s593_s11, %s593_s11, %s594_s12  }
  0x12   :  { %588 = dma.done.wait [#allocation3], 2432  }
  0x13   :  { %589 = vsyncadd [#allocation3], 4294964864  ;;  %v595_v0 = vmov 0.0|0.0   ;;  %v42_v1 = vld [vmem:[#allocation2] sm:$0xff]  ;;  %v43_v2 = vld [vmem:[#allocation2 + $0x8] sm:$0xff]  ;;  %vm70_vm0 = vcmask 179200  }
  0x14   :  { %461 = vmatprep.subr.bf16.mxu0 %v595_v0  ;;  %488 = vmatprep.subr.bf16.mxu1 %v595_v0  ;;  %v44_v3 = vld [vmem:[#allocation2 + $0x10] sm:$0xff]  ;;  %v462_v4 = vpack.c.bf16 %v43_v2, %v42_v1  ;;  %v45_v5 = vld [vmem:[#allocation2 + $0x18] sm:$0xff]  ;;  %v46_v7 = vld [vmem:[#allocation2 + $0x20] sm:$0xff]  ;;  %v596_v51 = vmov 0.0   ;;  %vm73_vm1 = vcmask 1045504   ;;  %vm597_vm2 = vmmov 0  }
  0x15   :  { %v465_v6 = vpack.c.bf16 %v45_v5, %v44_v3  ;;  %v47_v8 = vld [vmem:[#allocation2 + $0x28] sm:$0xff]  ;;  %v657_v9 = vld [vmem:[%s801_s0] sm:$0xff]  ;;  %v150_v14 = vld [vmem:[%s804_s3 + $0x10] sm:$0xff]  ;;  %423 = vmatprep.mubr.msk.f32.mxu1 %vm597_vm2, %v596_v51  ;;  %s598_s8 = smov [#allocation5]   ;;  %vm335_vm3 = vcmask 60416  }
  0x16   :  { %463 = vmatpush1.bf16.msra.mxu0 %v462_v4  ;;  %v148_v10 = vld [vmem:[%s804_s3] sm:$0xff]  ;;  %v468_v11 = vpack.c.bf16 %v47_v8, %v46_v7  ;;  %v69_v12 = vcombine.high %v657_v9, %v657_v9  ;;  %v149_v13 = vld [vmem:[%s804_s3 + $0x8] sm:$0xff]  ;;  %v151_v15 = vld [vmem:[%s804_s3 + $0x18] sm:$0xff]  ;;  %s343_s9 = sshll.u32 %s598_s8, 4  ;;  %s344_s9 = int_to_ptr.vmem [resolvable:$true] %s343_s9 }
  0x17   :  { %464 = vmatprep.subr.bf16.mxu0 %v595_v0  ;;  %v48_v16 = vld [vmem:[#allocation2 + $0x30] sm:$0xff]  ;;  %v49_v17 = vld [vmem:[#allocation2 + $0x38] sm:$0xff]  ;;  %v489_v18 = vpack.c.bf16 %v149_v13, %v148_v10  ;;  %v492_v19 = vpack.c.bf16 %v151_v15, %v150_v14  ;;  %v152_v21 = vld [vmem:[%s804_s3 + $0x20] sm:$0xff]  ;;  %p571_p9 = scmp.lt.s32.totalorder %s344_s9, %s344_s9 }
  0x18   :  { %354 = vmatprep.mubr.msk.f32.mxu0 %vm70_vm0, %v69_v12  ;;  %v471_v20 = vpack.c.bf16 %v49_v17, %v48_v16  ;;  %v153_v22 = vld [vmem:[%s804_s3 + $0x28] sm:$0xff]  ;;  %v50_v23 = vld [vmem:[#allocation2 + $0x40] sm:$0xff]  ;;  %v154_v27 = vld [vmem:[%s804_s3 + $0x30] sm:$0xff] }
  0x19   :  { %490 = vmatpush3.bf16.msra.mxu1 %v489_v18  ;;  %v51_v24 = vld [vmem:[#allocation2 + $0x48] sm:$0xff]  ;;  %v495_v25 = vpack.c.bf16 %v153_v22, %v152_v21  ;;  %v155_v28 = vld [vmem:[%s804_s3 + $0x38] sm:$0xff]  ;;  %v52_v29 = vld [vmem:[#allocation2 + $0x50] sm:$0xff] }
  0x1a   :  { %466 = vmatpush1.bf16.msra.mxu0 %v465_v6  ;;  %491 = vmatprep.subr.bf16.mxu1 %v595_v0  ;;  %v474_v26 = vpack.c.bf16 %v51_v24, %v50_v23  ;;  %v53_v30 = vld [vmem:[#allocation2 + $0x58] sm:$0xff]  ;;  %v498_v31 = vpack.c.bf16 %v155_v28, %v154_v27  ;;  %v156_v33 = vld [vmem:[%s804_s3 + $0x40] sm:$0xff]  ;;  %v157_v34 = vld [vmem:[%s804_s3 + $0x48] sm:$0xff] }
  0x1b   :  { %467 = vmatprep.subr.bf16.mxu0 %v595_v0  ;;  %v477_v32 = vpack.c.bf16 %v53_v30, %v52_v29  ;;  %v54_v35 = vld [vmem:[#allocation2 + $0x60] sm:$0xff]  ;;  %v55_v36 = vld [vmem:[#allocation2 + $0x68] sm:$0xff]  ;;  %v501_v37 = vpack.c.bf16 %v157_v34, %v156_v33  ;;  %v158_v39 = vld [vmem:[%s804_s3 + $0x50] sm:$0xff] }
  0x1c   :  { %v480_v38 = vpack.c.bf16 %v55_v36, %v54_v35  ;;  %v159_v40 = vld [vmem:[%s804_s3 + $0x58] sm:$0xff]  ;;  %v56_v41 = vld [vmem:[#allocation2 + $0x70] sm:$0xff]  ;;  %v160_v45 = vld [vmem:[%s804_s3 + $0x60] sm:$0xff] }
  0x1d   :  { %493 = vmatpush3.bf16.msra.mxu1 %v492_v19  ;;  %v57_v42 = vld [vmem:[#allocation2 + $0x78] sm:$0xff]  ;;  %v504_v43 = vpack.c.bf16 %v159_v40, %v158_v39  ;;  %v161_v46 = vld [vmem:[%s804_s3 + $0x68] sm:$0xff]  ;;  %v58_v47 = vld [vmem:[#allocation2 + $0x80] sm:$0xff] }
  0x1e   :  { %469 = vmatpush1.bf16.msra.mxu0 %v468_v11  ;;  %494 = vmatprep.subr.bf16.mxu1 %v595_v0  ;;  %v483_v44 = vpack.c.bf16 %v57_v42, %v56_v41  ;;  %v59_v48 = vld [vmem:[#allocation2 + $0x88] sm:$0xff]  ;;  %v507_v49 = vpack.c.bf16 %v161_v46, %v160_v45  ;;  %v60_v52 = vld [vmem:[#allocation2 + $0x90] sm:$0x3f]  ;;  %v163_v54 = vld [vmem:[%s804_s3 + $0x78] sm:$0xff] }
  0x1f   :  { %470 = vmatprep.subr.bf16.mxu0 %v595_v0  ;;  %v486_v50 = vpack.c.bf16 %v59_v48, %v58_v47  ;;  %v162_v53 = vld [vmem:[%s804_s3 + $0x70] sm:$0xff]  ;;  %v352_v56 = vld [vmem:[%s803_s2] ss:$0 sm:$0xff]  ;;  %v243_v58 = vld [vmem:[%s806_s5 + $0x8] sm:$0xff] }
  0x20   :  { %v510_v55 = vpack.c.bf16 %v163_v54, %v162_v53  ;;  %v242_v57 = vld [vmem:[%s806_s5] sm:$0xff]  ;;  %v244_v1 = vld [vmem:[%s806_s5 + $0x10] sm:$0xff]  ;;  %v245_v2 = vld [vmem:[%s806_s5 + $0x18] sm:$0xff] }
  0x21   :  { %496 = vmatpush3.bf16.msra.mxu1 %v495_v25  ;;  %v513_v62 = vpack.c.bf16 %v243_v58, %v242_v57  ;;  %v516_v3 = vpack.c.bf16 %v245_v2, %v244_v1  ;;  %v246_v4 = vld [vmem:[%s806_s5 + $0x20] sm:$0xff]  ;;  %v247_v5 = vld [vmem:[%s806_s5 + $0x28] sm:$0xff]  ;;  %v248_v7 = vld [vmem:[%s806_s5 + $0x30] sm:$0xff] }
  0x22   :  { %472 = vmatpush1.bf16.msra.mxu0 %v471_v20  ;;  %497 = vmatprep.subr.bf16.mxu1 %v595_v0  ;;  %v519_v6 = vpack.c.bf16 %v247_v5, %v246_v4  ;;  %v249_v8 = vld [vmem:[%s806_s5 + $0x38] sm:$0xff]  ;;  %v250_v10 = vld [vmem:[%s806_s5 + $0x40] sm:$0xff]  ;;  %v251_v11 = vld [vmem:[%s806_s5 + $0x48] sm:$0xff] }
  0x23   :  { %473 = vmatprep.subr.bf16.mxu0 %v595_v0  ;;  %v525_v12 = vpack.c.bf16 %v251_v11, %v250_v10  ;;  %v252_v13 = vld [vmem:[%s806_s5 + $0x50] sm:$0xff]  ;;  %v253_v14 = vld [vmem:[%s806_s5 + $0x58] sm:$0xff]  ;;  %v254_v16 = vld [vmem:[%s806_s5 + $0x60] sm:$0xff] }
  0x24   :  { %v528_v15 = vpack.c.bf16 %v253_v14, %v252_v13  ;;  %v255_v17 = vld [vmem:[%s806_s5 + $0x68] sm:$0xff]  ;;  %v256_v19 = vld [vmem:[%s806_s5 + $0x70] sm:$0xff]  ;;  %v257_v20 = vld [vmem:[%s806_s5 + $0x78] sm:$0xff]  ;;  %s566_s5 = scalar_lea.vmem %s344_s9, 64 }
  0x25   :  { %499 = vmatpush3.bf16.msra.mxu1 %v498_v31  ;;  %v531_v18 = vpack.c.bf16 %v255_v17, %v254_v16  ;;  %v534_v21 = vpack.c.bf16 %v257_v20, %v256_v19  ;;  %v355_v22 = vld [vmem:[%s805_s4] ss:$0 sm:$0xff]  ;;  %p567_p8 = scmp.ne.s32.totalorder %s344_s9, %s566_s5  ;;  %p572_p10 = scmp.lt.s32.totalorder %s566_s5, %s566_s5 }
  0x26   :  { %475 = vmatpush1.bf16.msra.mxu0 %v474_v26  ;;  %500 = vmatprep.subr.bf16.mxu1 %v595_v0 }
  0x27   :  { %476 = vmatprep.subr.bf16.mxu0 %v595_v0  ;;  %p573_p11 = por %p572_p10, %p571_p9 }
  0x29   :  { %502 = vmatpush3.bf16.msra.mxu1 %v501_v37  ;;  %p574_p12 = pnand %p573_p11, %p567_p8 }
  0x2a   :  { %478 = vmatpush1.bf16.msra.mxu0 %v477_v32  ;;  %503 = vmatprep.subr.bf16.mxu1 %v595_v0 }
  0x2b   :  { %479 = vmatprep.subr.bf16.mxu0 %v595_v0 }
  0x2d   :  { %505 = vmatpush3.bf16.msra.mxu1 %v504_v43 }
  0x2e   :  { %481 = vmatpush1.bf16.msra.mxu0 %v480_v38  ;;  %506 = vmatprep.subr.bf16.mxu1 %v595_v0 }
  0x2f   :  { %482 = vmatprep.subr.bf16.mxu0 %v595_v0 }
  0x31   :  { %508 = vmatpush3.bf16.msra.mxu1 %v507_v49 }
  0x32   :  { %484 = vmatpush1.bf16.msra.mxu0 %v483_v44  ;;  %509 = vmatprep.subr.bf16.mxu1 %v595_v0 }
  0x33   :  { %485 = vmatprep.subr.bf16.mxu0 %v595_v0 }
  0x35   :  { %511 = vmatpush3.bf16.msra.mxu1 %v510_v55 }
  0x36   :  { %487 = vmatpush1.bf16.msra.mxu0 %v486_v50  ;;  %512 = vmatprep.subr.bf16.mxu1 %v595_v0 }
  0x37   :  { %113 = vmatprep.subr.mxu0 %v596_v51 }
  0x3a   :  { %353 = vmatpush1.msk.msra.mxu0 %vm73_vm1, %v60_v52 }
  0x3b   :  { %142 = vmatmul.mubr.f32.vlgmr.msra.gmra.mrb[0].mxu0 %v657_v9  ;;  %v522_v9 = vpack.c.bf16 %v249_v8, %v248_v7 }
 0x10e   :  { %v143_v59 = vpop.f32.mrb[0].mxu0 }
 0x10f   :  { %v144_v60 = vadd.f32 %v352_v56, %v143_v59  ;;  %v145_v61 = vpop.f32.mrb[1].mxu0 }
 0x111   :  { %v147_v63 = vmax.f32 %v144_v60, 0.0 }
 0x113   :  { %424 = vmatmul.mubr.f32.vlgmr.msra.gmra.mrb[0].mxu1 %v147_v63 }
 0x114   :  { %514 = vmatpush3.bf16.msra.mxu1 %v513_v62  ;;  %458 = vmatprep.mubr.msk.f32.mxu1 %vm597_vm2, %v596_v51 }
 0x115   :  { %515 = vmatprep.subr.bf16.mxu1 %v595_v0 }
 0x118   :  { %517 = vmatpush3.bf16.msra.mxu1 %v516_v3 }
 0x119   :  { %518 = vmatprep.subr.bf16.mxu1 %v595_v0 }
 0x11c   :  { %520 = vmatpush3.bf16.msra.mxu1 %v519_v6 }
 0x11d   :  { %521 = vmatprep.subr.bf16.mxu1 %v595_v0 }
 0x120   :  { %523 = vmatpush3.bf16.msra.mxu1 %v522_v9 }
 0x121   :  { %524 = vmatprep.subr.bf16.mxu1 %v595_v0 }
 0x124   :  { %526 = vmatpush3.bf16.msra.mxu1 %v525_v12 }
 0x125   :  { %527 = vmatprep.subr.bf16.mxu1 %v595_v0 }
 0x128   :  { %529 = vmatpush3.bf16.msra.mxu1 %v528_v15 }
 0x129   :  { %530 = vmatprep.subr.bf16.mxu1 %v595_v0 }
 0x12c   :  { %532 = vmatpush3.bf16.msra.mxu1 %v531_v18 }
 0x12d   :  { %533 = vmatprep.subr.bf16.mxu1 %v595_v0  ;;  %v356_v0 = vld [vmem:[%s807_s6] ss:$0 sm:$0xff] }
 0x130   :  { %535 = vmatpush3.bf16.msra.mxu1 %v534_v21 }
 0x1e6   :  { %v237_v23 = vpop.f32.mrb[0].mxu1 }
 0x1e7   :  { %v238_v24 = vadd.f32 %v355_v22, %v237_v23  ;;  %v425_v25 = vpop.f32.mrb[1].mxu1 }
 0x1e9   :  { %v241_v26 = vmax.f32 %v238_v24, 0.0 }
 0x1eb   :  { %459 = vmatmul.mubr.f32.vlgmr.msra.gmra.mrb[2].mxu1 %v241_v26 }
 0x2be   :  { %v331_v27 = vpop.f32.mrb[2].mxu1 }
 0x2bf   :  { %v332_v28 = vadd.f32 %v356_v0, %v331_v27  ;;  %v460_v29 = vpop.f32.mrb[3].mxu1 }
 0x2c1   :  { %336 = vst.msk [vmem:[#allocation5] sm:$0xf] %vm335_vm3, %v332_v28 }
 0x2c2   :  { %577 = shalt.err (!%p574_p12)
}
 0x2c3   :  { %s578_s11 = scalar_lea.hbm %s808_s7, 64 }
 0x2c4   :  { %p579_p13 = scmp.ne.s32.totalorder %s808_s7, %s578_s11  ;;  %p582_p0 = scmp.lt.u32.totalorder %s578_s11, %s808_s7 }
 0x2c6   :  { %p584_p1 = pnand %p582_p0, %p579_p13 }
 0x2c8   :  { %587 = shalt.err (!%p584_p1)
}
 0x2c9   :  { %346 = dma.vmem_to_hbm [thread:$0]  %s344_s9, 64, %s808_s7, [#allocation4]  }
 0x2ca   :  { %590 = dma.done.wait [#allocation4], 64  }
 0x2cb   :  { %591 = vsyncadd [#allocation4], 4294967232 }
 0x2cc   :  { %350 = vsyncpa [#allocation3], 1 }
 0x2cd   :  { %351 = vsyncpa [#allocation4], 1 }

</bundles_post_ra>
